<compile_context>
chip_gen: v7x
topology: tpu7x:2x2x1
jax: 0.10.0
libtpu: 0.0.40
codegen_flags: <defaults>
</compile_context>

<pallas_src>
import jax
import jax.numpy as jnp
from jax.experimental import pallas as pl
from jax.experimental.pallas import tpu as pltpu


# ----------------------------------------------------------------------------- kernel
def _quant_kernel(x_ref, o_ref):
    # Upcast to f32 for the math (VALU/EUP have huge slack in this mem-bound
    # kernel), write back in the I/O dtype.
    x = x_ref[...].astype(jnp.float32)
    x = jnp.clip(x, 0.0, 1.0)
    o_ref[...] = (jnp.round(x * 255.0) / 255.0).astype(o_ref.dtype)


def _quant_jnp(v):
    """Plain-jnp fallback for tiny tails (< one lane row)."""
    y = jnp.round(jnp.clip(v.astype(jnp.float32), 0.0, 1.0) * 255.0) / 255.0
    return y.astype(v.dtype)


# ----------------------------------------------------------------------------- chip gating
_CHIP_CONFIG = None  # (target_block_bytes, vmem_limit_bytes or None, split_across_two_tc)


def _chip_config():
    global _CHIP_CONFIG
    if _CHIP_CONFIG is None:
        kind = ""
        try:
            kind = jax.devices()[0].device_kind.lower()
        except Exception:
            pass
        if "v7" in kind or "tpu7" in kind or "7x" in kind:
            # v7x: 3.2 TB/s HBM makes per-step overhead visible at 2 MiB blocks;
            # 8 MiB blocks -> ~32 MiB of double-buffered in+out, admitted via a
            # 48 MiB scoped-VMEM request (headroom under the 64 MiB physical VMEM).
            _CHIP_CONFIG = (8 * 1024 * 1024, 48 * 1024 * 1024, True)
        elif "v6" in kind or "tpu6" in kind:
            # v6e: 128 MiB physical VMEM; 8 MiB blocks with an explicit 64 MiB limit.
            _CHIP_CONFIG = (8 * 1024 * 1024, 64 * 1024 * 1024, False)
        else:
            # v5e (16 MiB default scoped VMEM) and unknown chips: 2 MiB blocks,
            # default scoped limit (4 buffers x 2 MiB fits comfortably).
            _CHIP_CONFIG = (2 * 1024 * 1024, None, False)
    return _CHIP_CONFIG


# ----------------------------------------------------------------------------- blocking heuristics
def _cdiv(a, b):
    return -(-a // b)


def _floor8(v):
    return (v // 8) * 8


def _ceil8(v):
    return _cdiv(v, 8) * 8


def _choose_block_rows(rows, target_rows, want_even_grid):
    """Pick block_rows: a multiple of 8 (or == rows for a single full block)."""
    target_rows = max(8, _floor8(target_rows))

    if target_rows >= rows:
        if want_even_grid and rows >= 16:
            # Would collapse to one block -> split in two so both v7x TCs work.
            return max(8, _ceil8(_cdiv(rows, 2)))
        return rows  # single full-array block (block shape == array shape)

    chosen = target_rows
    if want_even_grid:
        # Shrink (never grow: stays VMEM-safe) until the block count is even.
        lo = max(8, _floor8(target_rows // 2))
        for br in range(target_rows, lo - 1, -8):
            if _cdiv(rows, br) % 2 == 0:
                chosen = br
                break

    # Prefer a block count that divides rows exactly (no masked partial last
    # block / throwaway work), but only if it costs <= ~25% in block size.
    lo = max(8, _floor8(chosen - max(8, chosen // 4)))
    for br in range(chosen, lo - 1, -8):
        if rows % br == 0 and (not want_even_grid or (rows // br) % 2 == 0):
            return br
    return chosen


# ----------------------------------------------------------------------------- wrapper
# Dtypes streamed natively through the kernel (cast to f32 inside the kernel).
_KERNEL_DTYPES = (jnp.float32, jnp.bfloat16, jnp.float16,
                  jnp.int8, jnp.uint8, jnp.int32, jnp.uint32)
_SPLIT_MIN_BYTES = 2 * 1024 * 1024  # only force a 2-way split above this size
_LANE_CANDIDATES = (2048, 1024, 512, 256, 128)


def quantization(x):
    """Pallas implementation of Quantization.forward (inference forward pass)."""
    orig_shape = x.shape
    orig_dtype = jnp.dtype(x.dtype)
    n = int(x.size)
    if n == 0:
        return x

    # Keep the I/O in the input's dtype when the kernel can stream it directly
    # (saves two wrapper-side cast passes over HBM); otherwise go through f32.
    native = any(orig_dtype == jnp.dtype(d) for d in _KERNEL_DTYPES)
    io_dtype = orig_dtype if native else jnp.dtype(jnp.float32)

    xf = x.reshape(-1)
    if io_dtype != orig_dtype:
        xf = xf.astype(io_dtype)
    itemsize = io_dtype.itemsize

    # Lane width: widest multiple-of-128 slab that divides n exactly (no pad /
    # slice passes). Ragged n: take the widest lane that fits and run the kernel
    # on the largest lane-aligned prefix; the < lane_w tail is handled in jnp.
    lane_w = next((c for c in _LANE_CANDIDATES if n % c == 0), None)
    if lane_w is None:
        lane_w = next((c for c in _LANE_CANDIDATES if n >= c), None)
        if lane_w is None:
            # Fewer than 128 elements: a kernel launch costs more than the op.
            return _quant_jnp(xf).reshape(orig_shape).astype(orig_dtype)

    n_main = (n // lane_w) * lane_w
    rows = n_main // lane_w

    block_bytes, vmem_limit, split_two = _chip_config()
    want_even_grid = split_two and (n_main * itemsize >= _SPLIT_MIN_BYTES)
    target_rows = max(8, block_bytes // (lane_w * itemsize))
    block_rows = _choose_block_rows(rows, target_rows, want_even_grid)
    grid_rows = _cdiv(rows, block_rows)

    x_main = xf if n_main == n else xf[:n_main]
    x2d = x_main.reshape(rows, lane_w)

    out2d = pl.pallas_call(
        _quant_kernel,
        out_shape=jax.ShapeDtypeStruct((rows, lane_w), io_dtype),
        grid=(grid_rows,),
        # NOTE: default 2-deep buffering; add pipeline_mode=pl.Buffered(3) only
        # if a profile shows exposed DMA at block boundaries (and shrink blocks
        # on v7x so 3x(in+out) stays under 64 MiB VMEM).
        in_specs=[pl.BlockSpec((block_rows, lane_w), lambda i: (i, 0))],
        out_specs=pl.BlockSpec((block_rows, lane_w), lambda i: (i, 0)),
        compiler_params=pltpu.CompilerParams(
            # Elementwise rows are independent -> shard across TCs on multi-core chips.
            dimension_semantics=("parallel",),
            vmem_limit_bytes=vmem_limit,
        ),
    )(x2d)

    out_flat = out2d.reshape(-1)
    if n_main != n:
        # Sub-lane_w tail (< 2048 elements): negligible work, done in plain jnp
        # instead of padding the whole tensor (avoids full pad + slice HBM passes).
        tail_out = _quant_jnp(xf[n_main:])
        out_flat = jnp.concatenate([out_flat, tail_out])

    out = out_flat.reshape(orig_shape)
    if io_dtype != orig_dtype:
        out = out.astype(orig_dtype)
    return out


# TODO(synk): Quant.backward (straight-through gradient) is autograd-only and not
# part of the forward kernel; wrap `quantization` in jax.custom_vjp if training is needed.


if __name__ == "__main__":
    key = jax.random.PRNGKey(0)

    # NCHW, small shapes: batch=2, channels=4, spatial=16 (exercises clamping).
    x = jax.random.uniform(key, (2, 4, 16, 16), dtype=jnp.float32,
                           minval=-0.25, maxval=1.25)
    y = quantization(x)
    jax.block_until_ready(y)

    ref = jnp.round(jnp.clip(x, 0.0, 1.0) * 255.0) / 255.0
    assert y.shape == x.shape and y.dtype == x.dtype
    assert jnp.max(jnp.abs(y - ref)) < 1e-6

    # Ragged element count (3*5*7*11 = 1155, not a multiple of 128) ->
    # exercises the aligned-prefix kernel + jnp tail path.
    x2 = jax.random.uniform(jax.random.PRNGKey(1), (3, 5, 7, 11),
                            dtype=jnp.float32, minval=-0.25, maxval=1.25)
    y2 = quantization(x2)
    jax.block_until_ready(y2)
    ref2 = jnp.round(jnp.clip(x2, 0.0, 1.0) * 255.0) / 255.0
    assert y2.shape == x2.shape and y2.dtype == x2.dtype
    assert jnp.max(jnp.abs(y2 - ref2)) < 1e-6

    print("KERNEL_OK")
</pallas_src>

<mosaic_0001>
module attributes {stable_mosaic.version = 11 : i64} {
  func.func @_quant_kernel(%arg0: i32, %arg1: memref<1x2048xf32, #tpu.memory_space<vmem>>, %arg2: memref<1x2048xf32, #tpu.memory_space<vmem>>) attributes {dimension_semantics = [#tpu.dimension_semantics<parallel>], iteration_bounds = array<i64: 1>, scalar_prefetch = 0 : i64, scratch_operands = 0 : i64, tpu.core_type = #tpu.core_type<tc>, window_params = [{transform_indices = @transform_0, window_bounds = array<i64: 1, 2048>}, {transform_indices = @transform_1, window_bounds = array<i64: 1, 2048>}]} {
    %c0 = arith.constant 0 : index
    %c0_0 = arith.constant 0 : index
    %0 = vector.load %arg1[%c0, %c0_0] : memref<1x2048xf32, #tpu.memory_space<vmem>>, vector<1x2048xf32>
    %cst = arith.constant 0.000000e+00 : f32
    %cst_1 = arith.constant 1.000000e+00 : f32
    %1 = vector.broadcast %cst : f32 to vector<1x2048xf32>
    %2 = arith.maximumf %1, %0 : vector<1x2048xf32>
    %3 = vector.broadcast %cst_1 : f32 to vector<1x2048xf32>
    %4 = arith.minimumf %3, %2 : vector<1x2048xf32>
    %cst_2 = arith.constant 2.550000e+02 : f32
    %5 = vector.broadcast %cst_2 : f32 to vector<1x2048xf32>
    %6 = arith.mulf %4, %5 : vector<1x2048xf32>
    %7 = math.roundeven %6 : vector<1x2048xf32>
    %cst_3 = arith.constant 2.550000e+02 : f32
    %8 = vector.broadcast %cst_3 : f32 to vector<1x2048xf32>
    %9 = arith.divf %7, %8 : vector<1x2048xf32>
    %c0_4 = arith.constant 0 : index
    %c0_5 = arith.constant 0 : index
    %10 = vector.load %arg2[%c0_4, %c0_5] : memref<1x2048xf32, #tpu.memory_space<vmem>>, vector<1x2048xf32>
    tpu.vector_store %arg2[%c0_4, %c0_5], %9 {strides = array<i32>} : memref<1x2048xf32, #tpu.memory_space<vmem>>, vector<1x2048xf32>,
    return
  }
  func.func @transform_0(%arg0: i32) -> (i32, i32) {
    %c0_i32 = arith.constant 0 : i32
    %c0_i32_0 = arith.constant 0 : i32
    return %arg0, %c0_i32 : i32, i32
  }
  func.func @transform_1(%arg0: i32) -> (i32, i32) {
    %c0_i32 = arith.constant 0 : i32
    %c0_i32_0 = arith.constant 0 : i32
    return %arg0, %c0_i32 : i32, i32
  }
}

</mosaic_0001>

<bundles_post_ra>
// kernel: tpu_custom_call.1
= control target key start
LH: loop header
LB: loop body
LE: loop exit
PB: predicated region body
PF: predicated region fallthrough
CT: control target
= control target key end

     0   :  { %6 = vsyncpa [#allocation3], 0  ;;  %s139_s0 = inlined_call_operand.hbm [shape: f32[1,2048], index: 0, kind: input, shape index: {}]   ;;  %s140_s1 = inlined_call_operand.hbm [shape: f32[1,2048], index: 1, kind: output, shape index: {}]  }
   0x1   :  { %7 = vsyncpa [#allocation4], 0  ;;  %s103_s6 = smov [#allocation2]   ;;  %s55_s10 = scalar_lea.hbm %s139_s0, 256 }
   0x2   :  { %s14_s7 = sshll.u32 %s103_s6, 4  ;;  %p56_p0 = scmp.ne.s32.totalorder %s139_s0, %s55_s10  ;;  %s15_s7 = int_to_ptr.vmem [resolvable:$true] %s14_s7 }
   0x3   :  { %p59_p1 = scmp.lt.u32.totalorder %s55_s10, %s139_s0 }
   0x5   :  { %p61_p2 = pnand %p59_p1, %p56_p0 }
   0x7   :  { %64 = shalt.err (!%p61_p2)
}
   0x8   :  { %s65_s15 = scalar_lea.vmem %s15_s7, 256  ;;  %p70_p4 = scmp.lt.s32.totalorder %s15_s7, %s15_s7 }
   0x9   :  { %p66_p3 = scmp.ne.s32.totalorder %s15_s7, %s65_s15  ;;  %p71_p5 = scmp.lt.s32.totalorder %s65_s15, %s65_s15 }
   0xb   :  { %p72_p6 = por %p71_p5, %p70_p4 }
   0xd   :  { %p73_p7 = pnand %p72_p6, %p66_p3 }
   0xf   :  { %76 = shalt.err (!%p73_p7)
}
  0x10   :  { %17 = dma.hbm_to_vmem [thread:$0]  %s139_s0, 256, %s15_s7, [#allocation3]  }
  0x11   :  { %99 = dma.done.wait [#allocation3], 256  }
  0x12   :  { %100 = vsyncadd [#allocation3], 4294967040  ;;  %v21_v0 = vld [vmem:[#allocation2] sm:$0xff]  ;;  %v22_v1 = vld [vmem:[#allocation2 + $0x8] sm:$0xff]  ;;  %s104_s18 = smov [#allocation5]  }
  0x13   :  { %v23_v2 = vmax.f32 %v21_v0, 0.0  ;;  %v24_v3 = vmax.f32 %v22_v1, 0.0  ;;  %s42_s19 = sshll.u32 %s104_s18, 4  ;;  %s43_s19 = int_to_ptr.vmem [resolvable:$true] %s42_s19 }
  0x14   :  { %s77_s0 = scalar_lea.vmem %s43_s19, 256  ;;  %p82_p9 = scmp.lt.s32.totalorder %s43_s19, %s43_s19 }
  0x15   :  { %v25_v4 = vmin.f32 %v23_v2, 1.0  ;;  %v26_v5 = vmin.f32 %v24_v3, 1.0  ;;  %p78_p8 = scmp.ne.s32.totalorder %s43_s19, %s77_s0  ;;  %p83_p10 = scmp.lt.s32.totalorder %s77_s0, %s77_s0 }
  0x17   :  { %v27_v6 = vmul.f32 255.0, %v25_v4  ;;  %v28_v7 = vmul.f32 255.0, %v26_v5  ;;  %p84_p11 = por %p83_p10, %p82_p9 }
  0x19   :  { %v51_v8 = vround.rtne.f32 %v27_v6  ;;  %v52_v9 = vround.rtne.f32 %v28_v7  ;;  %p85_p12 = pnand %p84_p11, %p78_p8 }
  0x1b   :  { %v32_v10 = vmul.f32 0.003921569, %v51_v8  ;;  %v33_v11 = vmul.f32 0.003921569, %v52_v9 }
  0x1d   :  { %34 = vst [vmem:[#allocation5] sm:$0xff] %v32_v10  ;;  %35 = vst [vmem:[#allocation5 + $0x8] sm:$0xff] %v33_v11 }
  0x1e   :  { %88 = shalt.err (!%p85_p12)
}
  0x1f   :  { %s89_s22 = scalar_lea.hbm %s140_s1, 256 }
  0x20   :  { %p90_p13 = scmp.ne.s32.totalorder %s140_s1, %s89_s22  ;;  %p93_p0 = scmp.lt.u32.totalorder %s89_s22, %s140_s1 }
  0x22   :  { %p95_p1 = pnand %p93_p0, %p90_p13 }
  0x24   :  { %98 = shalt.err (!%p95_p1)
}
  0x25   :  { %45 = dma.vmem_to_hbm [thread:$0]  %s43_s19, 256, %s140_s1, [#allocation4]  }
  0x26   :  { %101 = dma.done.wait [#allocation4], 256  }
  0x27   :  { %102 = vsyncadd [#allocation4], 4294967040 }
  0x28   :  { %49 = vsyncpa [#allocation3], 1 }
  0x29   :  { %50 = vsyncpa [#allocation4], 1 }

</bundles_post_ra>
